<compile_context>
chip_gen: v7x
topology: tpu7x:2x2x1
jax: 0.10.0
libtpu: 0.0.40
codegen_flags: <defaults>
</compile_context>

<pallas_src>
import jax
import jax.numpy as jnp
from jax.experimental import pallas as pl
from jax.experimental.pallas import tpu as pltpu


def _cdiv(a, b):
    return -(-a // b)


def _round_up(x, m):
    return _cdiv(x, m) * m


def _vmem_budget_bytes():
    """Generation-aware scoped-VMEM budget: 3/4 of physical VMEM, capped at 96 MiB."""
    cap = None
    try:
        cap = getattr(pltpu.get_tpu_info(), "vmem_capacity_bytes", None)
    except Exception:
        cap = None
    if not cap:
        cap = 64 * 1024 * 1024  # conservative default (v7x per-core VMEM)
    return min(int(cap) * 3 // 4, 96 * 1024 * 1024)


def _make_kernel(*, bc, hw, tbc, thw, n_inner, need_row_mask, need_col_mask):
    n_chunks = thw // 128

    def kernel(t_ref, s_ref, m_ref, out_ref):
        p = pl.program_id(0)   # HW-sweep split (parallel, megacore)
        i = pl.program_id(1)   # BC tile        (parallel, megacore)
        k = pl.program_id(2)   # HW tile        (reduction, innermost)

        @pl.when(k == 0)
        def _():
            out_ref[...] = jnp.zeros_like(out_ref)

        diff = t_ref[...].astype(jnp.float32) - s_ref[...].astype(jnp.float32)
        sq = diff * diff * m_ref[...].astype(jnp.float32)          # (tbc, thw)

        # Ragged-tail masking: overhang block reads return garbage, so zero columns >= HW
        # (including phantom split tiles) and rows >= BC via a select (NaN-safe).
        if need_row_mask or need_col_mask:
            valid = None
            if need_col_mask:
                g = p * n_inner + k                                 # global HW tile index
                col = g * thw + jax.lax.broadcasted_iota(jnp.int32, (tbc, thw), 1)
                valid = col < hw
            if need_row_mask:
                row = i * tbc + jax.lax.broadcasted_iota(jnp.int32, (tbc, thw), 0)
                rmask = row < bc
                valid = rmask if valid is None else (valid & rmask)
            sq = jnp.where(valid, sq, 0.0)

        # Lane-dense accumulation: fold thw into a 128-wide partial with VPU adds.
        partial = sq[:, 0:128]
        for c in range(1, n_chunks):
            partial = partial + sq[:, c * 128:(c + 1) * 128]
        out_ref[...] += partial

    return kernel


def entro_beta_loss_forward(sigma, teacher_fm, student_fm, mask, norms,
                            *, tbc_max=256, thw_max=8192):
    """sigma: (B, C, 1, 1); teacher/student/mask: (B, C, H, W) any float/int dtype
    (bf16 / int8 masks stream at native width); norms: scalar."""
    B, C, H, W = teacher_fm.shape
    BC, HW = B * C, H * W

    t2d = teacher_fm.reshape(BC, HW)
    s2d = student_fm.reshape(BC, HW)
    m2d = mask.reshape(BC, HW)

    itemsizes = [jnp.dtype(x.dtype).itemsize for x in (t2d, s2d, m2d)]
    # dtype-aware sublane alignment: f32 -> 8, bf16 -> 16, int8/bool -> 32 rows.
    align = max(max(32 // it for it in itemsizes), 8)

    # BC (row, parallel) tile: aim for >= 2 tiles so both v7x TensorCores get work.
    tbc = min(int(tbc_max), _round_up(BC, align))
    if BC > align:
        tbc = min(tbc, _round_up(_cdiv(BC, 2), align))
    tbc = max(tbc, align)
    bc_tiles = _cdiv(BC, tbc)

    # HW (lane, reduction) tile: sized from the VMEM budget (double-buffered inputs).
    vmem_budget = _vmem_budget_bytes()
    input_budget = int(vmem_budget * 0.6)          # 2 buffers x 3 streamed inputs
    bytes_per_col = 2 * tbc * sum(itemsizes)
    thw = max((input_budget // bytes_per_col) // 128 * 128, 128)
    thw = min(thw, int(thw_max))
    hw_pad = _round_up(HW, 128)
    thw = min(thw, hw_pad)
    n_hw = _cdiv(HW, thw)
    thw = min(_round_up(_cdiv(HW, n_hw), 128), hw_pad)   # balance tiles
    n_hw = _cdiv(HW, thw)

    # If BC gives a single parallel tile, split the HW sweep two ways so the second
    # v7x TensorCore is not idle; per-split partials are summed in the wrapper.
    n_split = 2 if (bc_tiles == 1 and n_hw >= 2) else 1
    n_inner = _cdiv(n_hw, n_split)

    need_row_mask = (BC % tbc) != 0
    need_col_mask = (HW % thw) != 0 or (n_split * n_inner != n_hw)

    kernel = _make_kernel(bc=BC, hw=HW, tbc=tbc, thw=thw, n_inner=n_inner,
                          need_row_mask=need_row_mask, need_col_mask=need_col_mask)

    if n_split * n_inner == n_hw:
        def in_map(p, i, k):
            return (i, p * n_inner + k)
    else:
        last = n_hw - 1

        def in_map(p, i, k):
            # Clamp phantom tiles (odd tile count under the 2-way split) onto the last
            # real tile; their contribution is zeroed by the in-kernel column mask.
            return (i, jnp.minimum(p * n_inner + k, last))

    def out_map(p, i, k):
        return (p * bc_tiles + i, 0)

    out_rows = n_split * bc_tiles * tbc

    partials = pl.pallas_call(
        kernel,
        out_shape=jax.ShapeDtypeStruct((out_rows, 128), jnp.float32),
        grid_spec=pltpu.PrefetchScalarGridSpec(
            num_scalar_prefetch=0,
            grid=(n_split, bc_tiles, n_inner),
            in_specs=[
                pl.BlockSpec((tbc, thw), in_map),   # teacher
                pl.BlockSpec((tbc, thw), in_map),   # student
                pl.BlockSpec((tbc, thw), in_map),   # mask
            ],
            out_specs=pl.BlockSpec((tbc, 128), out_map),
        ),
        compiler_params=pltpu.CompilerParams(
            dimension_semantics=("parallel", "parallel", "arbitrary"),
            vmem_limit_bytes=vmem_budget,
        ),
    )(t2d, s2d, m2d)

    # Cheap O(B*C) tail in plain JAX: fold splits + lanes, apply 1/sigma^2 and /norms,
    # add the broadcast-aware log(sigma^2) term, divide by B*C.
    row = partials.reshape(n_split, bc_tiles * tbc, 128).sum(axis=(0, 2))[:BC]   # (BC,)
    sig2 = (sigma.astype(jnp.float32) ** 2).reshape(BC)
    d_term = jnp.sum(row / sig2) / jnp.asarray(norms, jnp.float32)
    sigma_term = jnp.sum(jnp.log(sig2)) * jnp.float32(HW)   # log(sigma^2) broadcasts over H*W
    return (d_term + sigma_term) / jnp.float32(BC)


def entro_beta_loss_reference(sigma, teacher_fm, student_fm, mask, norms):
    B, C, _, _ = teacher_fm.shape
    d_num = jnp.power(sigma, -2) * jnp.power(teacher_fm - student_fm, 2) * mask / norms
    sigma_loss = jnp.log(jnp.power(sigma, 2))
    return (d_num + sigma_loss).sum() / (B * C)


if __name__ == "__main__":
    # Module config (matches __init__): batch_size=2, channel_size=4, init_num=2
    B, C = 2, 4
    init_num = 2.0
    sigma = jnp.full((B, C, 1, 1), init_num, dtype=jnp.float32)

    key = jax.random.PRNGKey(0)

    def check(t, s, m, norms, tag, **kw):
        out = jax.block_until_ready(entro_beta_loss_forward(sigma, t, s, m, norms, **kw))
        ref = entro_beta_loss_reference(
            sigma, t.astype(jnp.float32), s.astype(jnp.float32),
            m.astype(jnp.float32), norms)
        assert jnp.allclose(out, ref, rtol=1e-5, atol=1e-5), (tag, out, ref)

    # 1) f32, aligned spatial dims (16x16).
    k1, k2, k3, key = jax.random.split(key, 4)
    t = jax.random.normal(k1, (B, C, 16, 16), dtype=jnp.float32)
    s = jax.random.normal(k2, (B, C, 16, 16), dtype=jnp.float32)
    m = (jax.random.uniform(k3, (B, C, 16, 16)) > 0.5).astype(jnp.float32)
    check(t, s, m, jnp.maximum(m.sum(), 1.0), "f32_aligned")

    # 2) bf16, ragged spatial dims (7x9): exercises the in-kernel row + column tail masks.
    k1, k2, k3, key = jax.random.split(key, 4)
    t = jax.random.normal(k1, (B, C, 7, 9), dtype=jnp.bfloat16)
    s = jax.random.normal(k2, (B, C, 7, 9), dtype=jnp.bfloat16)
    m = (jax.random.uniform(k3, (B, C, 7, 9)) > 0.5).astype(jnp.bfloat16)
    check(t, s, m, jnp.maximum(m.astype(jnp.float32).sum(), 1.0), "bf16_ragged")

    # 3) Small thw_max forces the 2-way parallel HW split (odd tile count -> phantom clamp).
    k1, k2, k3, key = jax.random.split(key, 4)
    t = jax.random.normal(k1, (B, C, 16, 24), dtype=jnp.float32)
    s = jax.random.normal(k2, (B, C, 16, 24), dtype=jnp.float32)
    m = (jax.random.uniform(k3, (B, C, 16, 24)) > 0.5).astype(jnp.float32)
    check(t, s, m, jnp.maximum(m.sum(), 1.0), "hw_split_phantom", thw_max=128)

    # 4) bf16 teacher/student + int8 mask: narrow streamed dtypes, 32-row alignment.
    k1, k2, k3, key = jax.random.split(key, 4)
    t = jax.random.normal(k1, (B, C, 16, 16), dtype=jnp.bfloat16)
    s = jax.random.normal(k2, (B, C, 16, 16), dtype=jnp.bfloat16)
    m = (jax.random.uniform(k3, (B, C, 16, 16)) > 0.5).astype(jnp.int8)
    check(t, s, m, jnp.maximum(m.astype(jnp.float32).sum(), 1.0), "bf16_int8_mask")

    print("KERNEL_OK")
</pallas_src>

<mosaic_0001>
module attributes {stable_mosaic.version = 11 : i64} {
  func.func @kernel(%arg0: i32, %arg1: i32, %arg2: i32, %arg3: memref<8x256xf32, #tpu.memory_space<vmem>>, %arg4: memref<8x256xf32, #tpu.memory_space<vmem>>, %arg5: memref<8x256xf32, #tpu.memory_space<vmem>>, %arg6: memref<8x128xf32, #tpu.memory_space<vmem>>) attributes {dimension_semantics = [#tpu.dimension_semantics<parallel>, #tpu.dimension_semantics<parallel>, #tpu.dimension_semantics<arbitrary>], iteration_bounds = array<i64: 1, 1, 1>, scalar_prefetch = 0 : i64, scratch_operands = 0 : i64, tpu.core_type = #tpu.core_type<tc>, window_params = [{transform_indices = @transform_0, window_bounds = array<i64: 8, 256>}, {transform_indices = @transform_1, window_bounds = array<i64: 8, 256>}, {transform_indices = @transform_2, window_bounds = array<i64: 8, 256>}, {transform_indices = @transform_3, window_bounds = array<i64: 8, 128>}]} {
    %c0_i32 = arith.constant 0 : i32
    %0 = arith.cmpi eq, %arg2, %c0_i32 : i32
    %1 = arith.extui %0 : i1 to i32
    %c0_i32_0 = arith.constant 0 : i32
    %2 = arith.cmpi ne, %1, %c0_i32_0 : i32
    scf.if %2 {
      %cst = arith.constant 0.000000e+00 : f32
      %15 = vector.broadcast %cst : f32 to vector<8x128xf32>
      %c0_10 = arith.constant 0 : index
      %c0_11 = arith.constant 0 : index
      %16 = vector.load %arg6[%c0_10, %c0_11] : memref<8x128xf32, #tpu.memory_space<vmem>>, vector<8x128xf32>
      tpu.vector_store %arg6[%c0_10, %c0_11], %15 {strides = array<i32>} : memref<8x128xf32, #tpu.memory_space<vmem>>, vector<8x128xf32>,
    } else {
    }
    %c0 = arith.constant 0 : index
    %c0_1 = arith.constant 0 : index
    %3 = vector.load %arg3[%c0, %c0_1] : memref<8x256xf32, #tpu.memory_space<vmem>>, vector<8x256xf32>
    %c0_2 = arith.constant 0 : index
    %c0_3 = arith.constant 0 : index
    %4 = vector.load %arg4[%c0_2, %c0_3] : memref<8x256xf32, #tpu.memory_space<vmem>>, vector<8x256xf32>
    %5 = arith.subf %3, %4 : vector<8x256xf32>
    %6 = arith.mulf %5, %5 : vector<8x256xf32>
    %c0_4 = arith.constant 0 : index
    %c0_5 = arith.constant 0 : index
    %7 = vector.load %arg5[%c0_4, %c0_5] : memref<8x256xf32, #tpu.memory_space<vmem>>, vector<8x256xf32>
    %8 = arith.mulf %6, %7 : vector<8x256xf32>
    %9 = vector.extract_strided_slice %8 {offsets = [0, 0], sizes = [8, 128], strides = [1, 1]} : vector<8x256xf32> to vector<8x128xf32>
    %10 = vector.extract_strided_slice %8 {offsets = [0, 128], sizes = [8, 128], strides = [1, 1]} : vector<8x256xf32> to vector<8x128xf32>
    %11 = arith.addf %9, %10 : vector<8x128xf32>
    %c0_6 = arith.constant 0 : index
    %c0_7 = arith.constant 0 : index
    %12 = vector.load %arg6[%c0_6, %c0_7] : memref<8x128xf32, #tpu.memory_space<vmem>>, vector<8x128xf32>
    %13 = arith.addf %12, %11 : vector<8x128xf32>
    %c0_8 = arith.constant 0 : index
    %c0_9 = arith.constant 0 : index
    %14 = vector.load %arg6[%c0_8, %c0_9] : memref<8x128xf32, #tpu.memory_space<vmem>>, vector<8x128xf32>
    tpu.vector_store %arg6[%c0_8, %c0_9], %13 {strides = array<i32>} : memref<8x128xf32, #tpu.memory_space<vmem>>, vector<8x128xf32>,
    return
  }
  func.func @transform_0(%arg0: i32, %arg1: i32, %arg2: i32) -> (i32, i32) {
    %c1_i32 = arith.constant 1 : i32
    %0 = arith.muli %arg0, %c1_i32 : i32
    %1 = arith.addi %0, %arg2 : i32
    %c0_i32 = arith.constant 0 : i32
    return %arg1, %1 : i32, i32
  }
  func.func @transform_1(%arg0: i32, %arg1: i32, %arg2: i32) -> (i32, i32) {
    %c1_i32 = arith.constant 1 : i32
    %0 = arith.muli %arg0, %c1_i32 : i32
    %1 = arith.addi %0, %arg2 : i32
    %c0_i32 = arith.constant 0 : i32
    return %arg1, %1 : i32, i32
  }
  func.func @transform_2(%arg0: i32, %arg1: i32, %arg2: i32) -> (i32, i32) {
    %c1_i32 = arith.constant 1 : i32
    %0 = arith.muli %arg0, %c1_i32 : i32
    %1 = arith.addi %0, %arg2 : i32
    %c0_i32 = arith.constant 0 : i32
    return %arg1, %1 : i32, i32
  }
  func.func @transform_3(%arg0: i32, %arg1: i32, %arg2: i32) -> (i32, i32) {
    %c1_i32 = arith.constant 1 : i32
    %0 = arith.muli %arg0, %c1_i32 : i32
    %1 = arith.addi %0, %arg1 : i32
    %c0_i32 = arith.constant 0 : i32
    %c0_i32_0 = arith.constant 0 : i32
    return %1, %c0_i32 : i32, i32
  }
}

</mosaic_0001>

<bundles_post_ra>
// kernel: tpu_custom_call.1
= control target key start
LH: loop header
LB: loop body
LE: loop exit
PB: predicated region body
PF: predicated region fallthrough
CT: control target
= control target key end

     0   :  { %8 = vsyncpa [#allocation3], 0  ;;  %s280_s0 = inlined_call_operand.hbm [shape: f32[8,256], index: 0, kind: input, shape index: {}]   ;;  %s281_s1 = inlined_call_operand.hbm [shape: f32[8,256], index: 1, kind: input, shape index: {}]   ;;  %s282_s2 = inlined_call_operand.hbm [shape: f32[8,256], index: 2, kind: input, shape index: {}]   ;;  %s283_s3 = inlined_call_operand.hbm [shape: f32[8,128], index: 3, kind: output, shape index: {}]  }
   0x1   :  { %9 = vsyncpa [#allocation6], 0 }
   0x2   :  { %10 = vsyncpa [#allocation4], 0  ;;  %s208_s12 = smov [#allocation5]   ;;  %s209_s14 = smov [#allocation2]  }
   0x3   :  { %s35_s13 = sshll.u32 %s208_s12, 4  ;;  %s21_s15 = sshll.u32 %s209_s14, 4  ;;  %s36_s13 = int_to_ptr.vmem [resolvable:$true] %s35_s13  ;;  %s22_s15 = int_to_ptr.vmem [resolvable:$true] %s21_s15 }
   0x4   :  { %s114_s18 = scalar_lea.hbm %s281_s1, 256 }
   0x5   :  { %p115_p0 = scmp.ne.s32.totalorder %s281_s1, %s114_s18  ;;  %p118_p1 = scmp.lt.u32.totalorder %s114_s18, %s281_s1 }
   0x7   :  { %p120_p2 = pnand %p118_p1, %p115_p0 }
   0x9   :  { %123 = shalt.err (!%p120_p2)
}
   0xa   :  { %s124_s23 = scalar_lea.vmem %s36_s13, 256  ;;  %p129_p4 = scmp.lt.s32.totalorder %s36_s13, %s36_s13 }
   0xb   :  { %p125_p3 = scmp.ne.s32.totalorder %s36_s13, %s124_s23  ;;  %p130_p5 = scmp.lt.s32.totalorder %s124_s23, %s124_s23 }
   0xd   :  { %p131_p6 = por %p130_p5, %p129_p4 }
   0xf   :  { %p132_p7 = pnand %p131_p6, %p125_p3 }
  0x11   :  { %135 = shalt.err (!%p132_p7)
}
  0x12   :  { %38 = dma.hbm_to_vmem [thread:$0]  %s281_s1, 256, %s36_s13, [#allocation6]  }
  0x13   :  { %s136_s28 = scalar_lea.hbm %s280_s0, 256 }
  0x14   :  { %p137_p8 = scmp.ne.s32.totalorder %s280_s0, %s136_s28  ;;  %p140_p9 = scmp.lt.u32.totalorder %s136_s28, %s280_s0 }
  0x16   :  { %p142_p10 = pnand %p140_p9, %p137_p8 }
  0x18   :  { %145 = shalt.err (!%p142_p10)
}
  0x19   :  { %s146_s6 = scalar_lea.vmem %s22_s15, 256  ;;  %p151_p12 = scmp.lt.s32.totalorder %s22_s15, %s22_s15 }
  0x1a   :  { %p147_p11 = scmp.ne.s32.totalorder %s22_s15, %s146_s6  ;;  %p152_p13 = scmp.lt.s32.totalorder %s146_s6, %s146_s6 }
  0x1c   :  { %p153_p0 = por %p152_p13, %p151_p12 }
  0x1e   :  { %p154_p1 = pnand %p153_p0, %p147_p11 }
  0x20   :  { %157 = shalt.err (!%p154_p1)
}
  0x21   :  { %24 = dma.hbm_to_vmem [thread:$0]  %s280_s0, 256, %s22_s15, [#allocation3]  }
  0x22   :  { %s210_s8 = smov [#allocation7]   ;;  %s158_s12 = scalar_lea.hbm %s282_s2, 256 }
  0x23   :  { %s49_s9 = sshll.u32 %s210_s8, 4  ;;  %p159_p2 = scmp.ne.s32.totalorder %s282_s2, %s158_s12  ;;  %s50_s9 = int_to_ptr.vmem [resolvable:$true] %s49_s9 }
  0x24   :  { %p162_p3 = scmp.lt.u32.totalorder %s158_s12, %s282_s2 }
  0x26   :  { %p164_p4 = pnand %p162_p3, %p159_p2 }
  0x28   :  { %167 = shalt.err (!%p164_p4)
}
  0x29   :  { %s168_s18 = scalar_lea.vmem %s50_s9, 256  ;;  %p173_p6 = scmp.lt.s32.totalorder %s50_s9, %s50_s9 }
  0x2a   :  { %p169_p5 = scmp.ne.s32.totalorder %s50_s9, %s168_s18  ;;  %p174_p7 = scmp.lt.s32.totalorder %s168_s18, %s168_s18 }
  0x2c   :  { %p175_p8 = por %p174_p7, %p173_p6 }
  0x2e   :  { %p176_p9 = pnand %p175_p8, %p169_p5 }
  0x30   :  { %179 = shalt.err (!%p176_p9)
}
  0x31   :  { %52 = dma.hbm_to_vmem [thread:$0]  %s282_s2, 256, %s50_s9, [#allocation6]  }
  0x32   :  { %202 = dma.done.wait [#allocation3], 256  }
  0x33   :  { %203 = vsyncadd [#allocation3], 4294967040 }
  0x34   :  { %204 = dma.done.wait [#allocation6], 512  }
  0x35   :  { %205 = vsyncadd [#allocation6], 4294966784  ;;  %v74_v0 = vld [vmem:[#allocation2] sm:$0xff]  ;;  %v75_v1 = vld [vmem:[#allocation2 + $0x8] sm:$0xff]  ;;  %s211_s19 = smov [#allocation8]  }
  0x36   :  { %v76_v2 = vld [vmem:[#allocation5] sm:$0xff]  ;;  %v77_v3 = vld [vmem:[#allocation5 + $0x8] sm:$0xff]  ;;  %v82_v6 = vld [vmem:[#allocation7] sm:$0xff]  ;;  %s99_s20 = sshll.u32 %s211_s19, 4  ;;  %s100_s20 = int_to_ptr.vmem [resolvable:$true] %s99_s20 }
  0x37   :  { %v78_v4 = vsub.f32 %v74_v0, %v76_v2  ;;  %v79_v5 = vsub.f32 %v75_v1, %v77_v3  ;;  %v83_v8 = vld [vmem:[#allocation7 + $0x8] sm:$0xff]  ;;  %s180_s2 = scalar_lea.vmem %s100_s20, 128  ;;  %p185_p11 = scmp.lt.s32.totalorder %s100_s20, %s100_s20 }
  0x38   :  { %p181_p10 = scmp.ne.s32.totalorder %s100_s20, %s180_s2  ;;  %p186_p12 = scmp.lt.s32.totalorder %s180_s2, %s180_s2 }
  0x39   :  { %v80_v7 = vmul.f32 %v78_v4, %v78_v4  ;;  %v81_v9 = vmul.f32 %v79_v5, %v79_v5 }
  0x3a   :  { %p187_p13 = por %p186_p12, %p185_p11 }
  0x3b   :  { %v84_v10 = vmul.f32 %v82_v6, %v80_v7  ;;  %v85_v11 = vmul.f32 %v83_v8, %v81_v9 }
  0x3c   :  { %p188_p0 = pnand %p187_p13, %p181_p10 }
  0x3d   :  { %v86_v12 = vadd.f32 %v85_v11, %v84_v10 }
  0x3f   :  { %89 = vst [vmem:[#allocation8] sm:$0xff] %v86_v12 }
  0x40   :  { %191 = shalt.err (!%p188_p0)
}
  0x41   :  { %s192_s23 = scalar_lea.hbm %s283_s3, 128 }
  0x42   :  { %p193_p1 = scmp.ne.s32.totalorder %s283_s3, %s192_s23  ;;  %p196_p2 = scmp.lt.u32.totalorder %s192_s23, %s283_s3 }
  0x44   :  { %p198_p3 = pnand %p196_p2, %p193_p1 }
  0x46   :  { %201 = shalt.err (!%p198_p3)
}
  0x47   :  { %102 = dma.vmem_to_hbm [thread:$0]  %s100_s20, 128, %s283_s3, [#allocation4]  }
  0x48   :  { %206 = dma.done.wait [#allocation4], 128  }
  0x49   :  { %207 = vsyncadd [#allocation4], 4294967168 }
  0x4a   :  { %106 = vsyncpa [#allocation3], 1 }
  0x4b   :  { %107 = vsyncpa [#allocation6], 1 }
  0x4c   :  { %108 = vsyncpa [#allocation4], 1 }

</bundles_post_ra>
